<compile_context>
chip_gen: v7x
topology: tpu7x:2x2x1
jax: 0.10.0
libtpu: 0.0.40
codegen_flags: <defaults>
</compile_context>

<pallas_src>
import jax
import jax.numpy as jnp
from jax.experimental import pallas as pl
from jax.experimental.pallas import tpu as pltpu


def _masked_mean_kernel(emb_ref, w_ref, out_ref):
    # emb_ref : (bn, bl, H)  native dtype (f32 / bf16)
    # w_ref   : (bn, bl)     f32, already normalized by clamp(sum(mask), 1e-9)
    # out_ref : (bn, H)      f32, resident across the seq (reduction) grid axis
    @pl.when(pl.program_id(1) == 0)
    def _():
        out_ref[...] = jnp.zeros_like(out_ref)

    emb = emb_ref[...].astype(jnp.float32)
    w = w_ref[...]
    out_ref[...] += jnp.sum(emb * w[:, :, None], axis=1)


def _round_up(x, m):
    return ((x + m - 1) // m) * m


def _block_bytes(bn, bl, H, emb_itemsize):
    """Double-buffered VMEM footprint of one grid step's blocks."""
    emb = bn * _round_up(bl, 8) * _round_up(H, 128) * emb_itemsize
    w = _round_up(bn, 8) * _round_up(bl, 128) * 4
    out = _round_up(bn, 8) * _round_up(H, 128) * 4
    return 2 * (emb + w + out)


def _pick_tiles(N, L, H, emb_itemsize, budget_bytes):
    """Pick (batch_tile, seq_tile) fitting the VMEM budget, biggest first."""
    # Single full block if it fits (e.g. small batches / short sequences).
    if _block_bytes(N, L, H, emb_itemsize) <= budget_bytes:
        return N, L

    # Tile the batch in multiples of 8 (sublane rule); partial last block is
    # handled by the cdiv grid, so bn need not divide N.
    if N > 8:
        bn = min((N // 8) * 8, 1024)
        while bn > 8 and _block_bytes(bn, L, H, emb_itemsize) > budget_bytes:
            bn -= 8
        if _block_bytes(bn, L, H, emb_itemsize) <= budget_bytes:
            return bn, L
        bn = 8
    else:
        bn = N

    # Batch tiling alone is not enough: also tile the sequence (reduction) axis.
    # bl must be a multiple of 128 (lane rule for the 2-D weights block) that
    # divides L exactly so padded garbage never contributes to real rows.
    bl = (L // 128) * 128
    while bl >= 128:
        if L % bl == 0 and _block_bytes(bn, bl, H, emb_itemsize) <= budget_bytes:
            return bn, bl
        bl -= 128
    # TODO(synk): masked partial-L tiles for L not divisible by 128.
    return bn, L


def pooling_forward(token_embeddings, attention_mask, *,
                    vmem_block_budget=16 * 1024 * 1024):
    """Masked mean pooling.

    Args:
      token_embeddings: (N, L, H) float array (model_output[0]); any float dtype.
      attention_mask:   (N, L) int or float array from the tokenizer.
    Returns:
      (N, H) float32 pooled embeddings.
    """
    N, L, H = token_embeddings.shape

    # Pre-normalized weights: w = mask / clamp(sum(mask), 1e-9).  This is an
    # N*L-element tensor (tiny), so the normalization is done once here instead
    # of repeatedly inside the kernel.
    mask = attention_mask.astype(jnp.float32)                        # (N, L)
    den = jnp.maximum(jnp.sum(mask, axis=1, keepdims=True), 1e-9)    # (N, 1)
    weights = mask / den                                             # (N, L)

    bn, bl = _pick_tiles(N, L, H, jnp.dtype(token_embeddings.dtype).itemsize,
                         vmem_block_budget)
    grid = (pl.cdiv(N, bn), pl.cdiv(L, bl))

    return pl.pallas_call(
        _masked_mean_kernel,
        out_shape=jax.ShapeDtypeStruct((N, H), jnp.float32),
        grid_spec=pltpu.PrefetchScalarGridSpec(
            num_scalar_prefetch=0,
            grid=grid,
            in_specs=[
                # embeddings: batch x seq tiled, full H per block -> contiguous,
                # lane-dense DMAs in the hidden dim.
                pl.BlockSpec((bn, bl, H), lambda i, l: (i, l, 0)),
                # normalized mask weights
                pl.BlockSpec((bn, bl), lambda i, l: (i, l)),
            ],
            # Output block index is independent of the seq axis -> stays
            # resident in VMEM as the f32 accumulator.
            out_specs=pl.BlockSpec((bn, H), lambda i, l: (i, 0)),
        ),
        compiler_params=pltpu.CompilerParams(
            dimension_semantics=("parallel", "arbitrary"),
            # Blocks are budgeted to <=16 MiB double-buffered; a 32 MiB scoped
            # limit leaves headroom and is safe on v5e/v6e (128 MiB) and v7x
            # (64 MiB physical).
            vmem_limit_bytes=32 * 1024 * 1024,
        ),
    )(token_embeddings, weights)


def pooling_reference(token_embeddings, attention_mask):
    mask = attention_mask.astype(jnp.float32)[..., None]
    num = jnp.sum(token_embeddings.astype(jnp.float32) * mask, axis=1)
    den = jnp.maximum(jnp.sum(mask, axis=1), 1e-9)
    return num / den


if __name__ == "__main__":
    key = jax.random.PRNGKey(0)
    k_emb, _ = jax.random.split(key)

    N, L, H = 2, 8, 768  # fixed-size N x 768 output, as in the module docstring
    token_embeddings = jax.random.normal(k_emb, (N, L, H), dtype=jnp.float32)
    # deterministic ragged attention mask (first rows valid, rest padded)
    lengths = jnp.array([5, 8], dtype=jnp.int32)
    attention_mask = (jnp.arange(L)[None, :] < lengths[:, None]).astype(jnp.int32)

    out = pooling_forward(token_embeddings, attention_mask)
    out = jax.block_until_ready(out)

    ref = pooling_reference(token_embeddings, attention_mask)
    assert out.shape == (N, H)
    assert jnp.allclose(out, ref, atol=1e-5, rtol=1e-5), "mismatch vs reference"

    print("KERNEL_OK")
</pallas_src>

<mosaic_0001>
module attributes {stable_mosaic.version = 11 : i64} {
  func.func @_masked_mean_kernel(%arg0: i32, %arg1: i32, %arg2: memref<2x8x768xf32, #tpu.memory_space<vmem>>, %arg3: memref<2x8xf32, #tpu.memory_space<vmem>>, %arg4: memref<2x768xf32, #tpu.memory_space<vmem>>) attributes {dimension_semantics = [#tpu.dimension_semantics<parallel>, #tpu.dimension_semantics<arbitrary>], iteration_bounds = array<i64: 1, 1>, scalar_prefetch = 0 : i64, scratch_operands = 0 : i64, tpu.core_type = #tpu.core_type<tc>, window_params = [{transform_indices = @transform_0, window_bounds = array<i64: 2, 8, 768>}, {transform_indices = @transform_1, window_bounds = array<i64: 2, 8>}, {transform_indices = @transform_2, window_bounds = array<i64: 2, 768>}]} {
    %c0_i32 = arith.constant 0 : i32
    %0 = arith.cmpi eq, %arg1, %c0_i32 : i32
    %1 = arith.extui %0 : i1 to i32
    %c0_i32_0 = arith.constant 0 : i32
    %2 = arith.cmpi ne, %1, %c0_i32_0 : i32
    scf.if %2 {
      %cst_9 = arith.constant 0.000000e+00 : f32
      %12 = vector.broadcast %cst_9 : f32 to vector<2x768xf32>
      %c0_10 = arith.constant 0 : index
      %c0_11 = arith.constant 0 : index
      %13 = vector.load %arg4[%c0_10, %c0_11] : memref<2x768xf32, #tpu.memory_space<vmem>>, vector<2x768xf32>
      tpu.vector_store %arg4[%c0_10, %c0_11], %12 {strides = array<i32>} : memref<2x768xf32, #tpu.memory_space<vmem>>, vector<2x768xf32>,
    } else {
    }
    %c0 = arith.constant 0 : index
    %c0_1 = arith.constant 0 : index
    %c0_2 = arith.constant 0 : index
    %3 = vector.load %arg2[%c0, %c0_1, %c0_2] : memref<2x8x768xf32, #tpu.memory_space<vmem>>, vector<2x8x768xf32>
    %c0_3 = arith.constant 0 : index
    %c0_4 = arith.constant 0 : index
    %4 = vector.load %arg3[%c0_3, %c0_4] : memref<2x8xf32, #tpu.memory_space<vmem>>, vector<2x8xf32>
    %c0_5 = arith.constant 0 : index
    %c0_6 = arith.constant 0 : index
    %5 = vector.load %arg4[%c0_5, %c0_6] : memref<2x768xf32, #tpu.memory_space<vmem>>, vector<2x768xf32>
    %6 = vector.shape_cast %4 : vector<2x8xf32> to vector<2x8x1xf32>
    %7 = vector.broadcast %6 : vector<2x8x1xf32> to vector<2x8x768xf32>
    %8 = arith.mulf %3, %7 : vector<2x8x768xf32>
    %cst = arith.constant dense<0.000000e+00> : vector<2x768xf32>
    %9 = vector.multi_reduction <add>, %8, %cst [1] : vector<2x8x768xf32> to vector<2x768xf32>
    %10 = arith.addf %5, %9 : vector<2x768xf32>
    %c0_7 = arith.constant 0 : index
    %c0_8 = arith.constant 0 : index
    %11 = vector.load %arg4[%c0_7, %c0_8] : memref<2x768xf32, #tpu.memory_space<vmem>>, vector<2x768xf32>
    tpu.vector_store %arg4[%c0_7, %c0_8], %10 {strides = array<i32>} : memref<2x768xf32, #tpu.memory_space<vmem>>, vector<2x768xf32>,
    return
  }
  func.func @transform_0(%arg0: i32, %arg1: i32) -> (i32, i32, i32) {
    %c0_i32 = arith.constant 0 : i32
    %c0_i32_0 = arith.constant 0 : i32
    return %arg0, %arg1, %c0_i32 : i32, i32, i32
  }
  func.func @transform_1(%arg0: i32, %arg1: i32) -> (i32, i32) {
    %c0_i32 = arith.constant 0 : i32
    return %arg0, %arg1 : i32, i32
  }
  func.func @transform_2(%arg0: i32, %arg1: i32) -> (i32, i32) {
    %c0_i32 = arith.constant 0 : i32
    %c0_i32_0 = arith.constant 0 : i32
    return %arg0, %c0_i32 : i32, i32
  }
}

</mosaic_0001>

<bundles_post_ra>
// kernel: tpu_custom_call.1
= control target key start
LH: loop header
LB: loop body
LE: loop exit
PB: predicated region body
PF: predicated region fallthrough
CT: control target
= control target key end

     0   :  { %7 = vsyncpa [#allocation3], 0  ;;  %s355_s0 = inlined_call_operand.hbm [shape: f32[2,8,768], index: 0, kind: input, shape index: {}]   ;;  %s356_s1 = inlined_call_operand.vmem [shape: f32[2,8], index: 1, kind: input, shape index: {}]   ;;  %s357_s2 = inlined_call_operand.hbm [shape: f32[2,768], index: 2, kind: output, shape index: {}]  }
   0x1   :  { %8 = vsyncpa [#allocation4], 0  ;;  %s302_s9 = smov [#allocation2]   ;;  %s254_s13 = scalar_lea.hbm %s355_s0, 1536 }
   0x2   :  { %s14_s10 = sshll.u32 %s302_s9, 4  ;;  %p255_p0 = scmp.ne.s32.totalorder %s355_s0, %s254_s13  ;;  %s15_s10 = int_to_ptr.vmem [resolvable:$true] %s14_s10 }
   0x3   :  { %p258_p1 = scmp.lt.u32.totalorder %s254_s13, %s355_s0 }
   0x5   :  { %p260_p2 = pnand %p258_p1, %p255_p0 }
   0x7   :  { %263 = shalt.err (!%p260_p2)
}
   0x8   :  { %s264_s18 = scalar_lea.vmem %s15_s10, 1536  ;;  %p269_p4 = scmp.lt.s32.totalorder %s15_s10, %s15_s10 }
   0x9   :  { %p265_p3 = scmp.ne.s32.totalorder %s15_s10, %s264_s18  ;;  %p270_p5 = scmp.lt.s32.totalorder %s264_s18, %s264_s18 }
   0xb   :  { %p271_p6 = por %p270_p5, %p269_p4 }
   0xd   :  { %p272_p7 = pnand %p271_p6, %p265_p3 }
   0xf   :  { %275 = shalt.err (!%p272_p7)
}
  0x10   :  { %s303_s19 = smov 768   ;;  %s304_s20 = smov 48  }
  0x11   :  { %20 = dma.hbm_to_vmem [thread:$0]  %s355_s0, 1536, %s15_s10, [#allocation3], %s303_s19, %s303_s19, %s304_s20  }
  0x12   :  { %298 = dma.done.wait [#allocation3], 1536  }
  0x13   :  { %299 = vsyncadd [#allocation3], 4294965760  ;;  %v47_v0 = vlaneseq  ;;  %v44_v4 = vld [vmem:[%s356_s1] sm:$0x3]  ;;  %v305_v7 = vmov 0.0   ;;  %v38_v8 = vld [vmem:[#allocation2 + $0x30] sm:$0xff] }
  0x14   :  { %31 = vst [vmem:[#allocation5 + $0x8] sm:$0xf] %v305_v7  ;;  %v39_v9 = vld [vmem:[#allocation2 + $0x38] sm:$0xff]  ;;  %v40_v10 = vld [vmem:[#allocation2 + $0x40] sm:$0xff]  ;;  %v41_v11 = vld [vmem:[#allocation2 + $0x48] sm:$0xff]  ;;  %vm212_vm0 = vcmask 1041409  }
  0x15   :  { %v335_v1 = vshrl.u32 %v47_v0, 7  ;;  %v42_v12 = vld [vmem:[#allocation2 + $0x50] sm:$0xff]  ;;  %v43_v13 = vld [vmem:[#allocation2 + $0x58] sm:$0xff]  ;;  %v306_v19 = vmov 1983009808   ;;  %v32_v34 = vld [vmem:[#allocation2] sm:$0xff] }
  0x16   :  { %v160_v20 = vunpack.c.l.s4 %v306_v19  ;;  %v33_v35 = vld [vmem:[#allocation2 + $0x8] sm:$0xff]  ;;  %v34_v43 = vld [vmem:[#allocation2 + $0x10] sm:$0xff]  ;;  %v35_v44 = vld [vmem:[#allocation2 + $0x18] sm:$0xff]  ;;  %vm214_vm1 = vcmask 1043459   ;;  %vm216_vm2 = vcmask 1045509   ;;  %vm218_vm3 = vcmask 1047559  }
  0x17   :  { %v56_v2 = vsub.s32 1, %v335_v1  ;;  %v49_v3 = vsub.s32 0, %v335_v1  ;;  %v36_v53 = vld [vmem:[#allocation2 + $0x20] sm:$0xff]  ;;  %v37_v56 = vld [vmem:[#allocation2 + $0x28] sm:$0xff]  ;;  %s307_s0 = smov [#allocation5]  }
  0x18   :  { %v161_v36 = vunpack.c.0.s8 %v160_v20  ;;  %s239_s1 = sshll.u32 %s307_s0, 4  ;;  %s240_s1 = int_to_ptr.vmem [resolvable:$true] %s239_s1 }
  0x19   :  { %v57_v5 = vrot.slane %v44_v4, %v56_v2  ;;  %v50_v6 = vrot.slane %v44_v4, %v49_v3  ;;  %s276_s25 = scalar_lea.vmem %s240_s1, 192  ;;  %p281_p9 = scmp.lt.s32.totalorder %s240_s1, %s240_s1 }
  0x1a   :  { %v164_v4 = vsub.s32 %v161_v36, %v335_v1  ;;  %p277_p8 = scmp.ne.s32.totalorder %s240_s1, %s276_s25  ;;  %p282_p10 = scmp.lt.s32.totalorder %s276_s25, %s276_s25 }
  0x1b   :  { %59 = vbcast.lane.b32.xlu0 %v57_v5, 256 }
  0x1c   :  { %p283_p11 = por %p282_p10, %p281_p9 }
  0x1e   :  { %p284_p12 = pnand %p283_p11, %p277_p8 }
  0x1f   :  { %52 = vbcast.lane.b32.xlu0 %v50_v6, 256 }
  0x8d   :  { %v60_v14 = vpop.permute.xlu0 %59 }
  0x8e   :  { %v67_v15 = vmul.f32 %v60_v14, %v38_v8  ;;  %v68_v16 = vmul.f32 %v60_v14, %v39_v9  ;;  %v69_v17 = vmul.f32 %v60_v14, %v40_v10  ;;  %v70_v18 = vmul.f32 %v60_v14, %v41_v11 }
  0x8f   :  { %v71_v21 = vmul.f32 %v60_v14, %v42_v12  ;;  %v72_v22 = vmul.f32 %v60_v14, %v43_v13 }
  0x90   :  { %v109_v23 = vrot.slane %v67_v15, 4  ;;  %v115_v24 = vrot.slane %v68_v16, 4  ;;  %v121_v25 = vrot.slane %v69_v17, 4  ;;  %v127_v26 = vrot.slane %v70_v18, 4 }
  0x91   :  { %v133_v27 = vrot.slane %v71_v21, 4  ;;  %v139_v28 = vrot.slane %v72_v22, 4  ;;  %v53_v33 = vpop.permute.xlu0 %52 }
  0x92   :  { %v110_v29 = vadd.f32 %v109_v23, %v67_v15  ;;  %v116_v30 = vadd.f32 %v115_v24, %v68_v16  ;;  %v122_v31 = vadd.f32 %v121_v25, %v69_v17  ;;  %v128_v32 = vadd.f32 %v127_v26, %v70_v18 }
  0x93   :  { %v134_v37 = vadd.f32 %v133_v27, %v71_v21  ;;  %v140_v38 = vadd.f32 %v139_v28, %v72_v22  ;;  %v61_v47 = vmul.f32 %v53_v33, %v32_v34  ;;  %v62_v48 = vmul.f32 %v53_v33, %v33_v35 }
  0x94   :  { %v111_v39 = vrot.slane %v110_v29, 2  ;;  %v117_v40 = vrot.slane %v116_v30, 2  ;;  %v123_v41 = vrot.slane %v122_v31, 2  ;;  %v129_v42 = vrot.slane %v128_v32, 2 }
  0x95   :  { %v135_v45 = vrot.slane %v134_v37, 2  ;;  %v141_v46 = vrot.slane %v140_v38, 2  ;;  %v63_v57 = vmul.f32 %v53_v33, %v34_v43  ;;  %v64_v58 = vmul.f32 %v53_v33, %v35_v44 }
  0x96   :  { %v112_v49 = vadd.f32 %v111_v39, %v110_v29  ;;  %v118_v50 = vadd.f32 %v117_v40, %v116_v30  ;;  %v124_v51 = vadd.f32 %v123_v41, %v122_v31  ;;  %v130_v52 = vadd.f32 %v129_v42, %v128_v32 }
  0x97   :  { %v136_v54 = vadd.f32 %v135_v45, %v134_v37  ;;  %v142_v55 = vadd.f32 %v141_v46, %v140_v38  ;;  %v65_v0 = vmul.f32 %v53_v33, %v36_v53  ;;  %v73_v2 = vrot.slane %v61_v47, 4 }
  0x98   :  { %v113_v59 = vrot.slane %v112_v49, 1  ;;  %v119_v60 = vrot.slane %v118_v50, 1  ;;  %v125_v61 = vrot.slane %v124_v51, 1  ;;  %v131_v62 = vrot.slane %v130_v52, 1 }
  0x99   :  { %v137_v63 = vrot.slane %v136_v54, 1  ;;  %v79_v3 = vrot.slane %v62_v48, 4  ;;  %v143_v5 = vrot.slane %v142_v55, 1  ;;  %v66_v6 = vmul.f32 %v53_v33, %v37_v56 }
  0x9a   :  { %v114_v7 = vadd.f32 %v113_v59, %v112_v49  ;;  %v120_v8 = vadd.f32 %v119_v60, %v118_v50  ;;  %v74_v9 = vadd.f32 %v73_v2, %v61_v47  ;;  %v126_v11 = vadd.f32 %v125_v61, %v124_v51 }
  0x9b   :  { %v80_v10 = vadd.f32 %v79_v3, %v62_v48  ;;  %v132_v12 = vadd.f32 %v131_v62, %v130_v52  ;;  %v85_v13 = vrot.slane %v63_v57, 4  ;;  %v91_v14 = vrot.slane %v64_v58, 4 }
  0x9c   :  { %v138_v15 = vadd.f32 %v137_v63, %v136_v54  ;;  %v75_v16 = vrot.slane %v74_v9, 2  ;;  %v97_v18 = vrot.slane %v65_v0, 4  ;;  %v144_v19 = vadd.f32 %v143_v5, %v142_v55 }
  0x9d   :  { %v81_v17 = vrot.slane %v80_v10, 2  ;;  %v86_v20 = vadd.f32 %v85_v13, %v63_v57  ;;  %v92_v21 = vadd.f32 %v91_v14, %v64_v58  ;;  %v103_v22 = vrot.slane %v66_v6, 4 }
  0x9e   :  { %v182_v23 = vcombine.low %v114_v7, %v120_v8  ;;  %v76_v1 = vadd.f32 %v75_v16, %v74_v9  ;;  %v98_v25 = vadd.f32 %v97_v18, %v65_v0  ;;  %v183_v26 = vcombine.low %v126_v11, %v132_v12  ;;  %v46_v0 = vld [vmem:[#allocation5 + $0x8] sm:$0xf] }
  0x9f   :  { %v82_v24 = vadd.f32 %v81_v17, %v80_v10  ;;  %v87_v27 = vrot.slane %v86_v20, 2  ;;  %v93_v28 = vrot.slane %v92_v21, 2  ;;  %v104_v29 = vadd.f32 %v103_v22, %v66_v6 }
  0xa0   :  { %v77_v30 = vrot.slane %v76_v1, 1  ;;  %v99_v32 = vrot.slane %v98_v25, 2  ;;  %v199_v33 = vcombine.low %v138_v15, %v144_v19  ;;  %v190_v40 = vrot.slane %v182_v23, %v164_v4 }
  0xa1   :  { %v83_v31 = vrot.slane %v82_v24, 1  ;;  %v88_v34 = vadd.f32 %v87_v27, %v86_v20  ;;  %v94_v35 = vadd.f32 %v93_v28, %v92_v21  ;;  %v105_v36 = vrot.slane %v104_v29, 2 }
  0xa2   :  { %v78_v37 = vadd.f32 %v77_v30, %v76_v1  ;;  %v100_v39 = vadd.f32 %v99_v32, %v98_v25  ;;  %v197_v44 = vrot.slane %v183_v26, %v164_v4  ;;  %v206_v51 = vrot.slane %v199_v33, %v164_v4 }
  0xa3   :  { %v84_v38 = vadd.f32 %v83_v31, %v82_v24  ;;  %v89_v41 = vrot.slane %v88_v34, 1  ;;  %v95_v42 = vrot.slane %v94_v35, 1  ;;  %v106_v43 = vadd.f32 %v105_v36, %v104_v29 }
  0xa4   :  { %v101_v45 = vrot.slane %v100_v39, 1  ;;  %v198_v55 = vcombine.low %v190_v40, %v197_v44  ;;  %v222_v61 = vrot.slane %v206_v51, 7 }
  0xa5   :  { %v157_v46 = vcombine.low %v78_v37, %v84_v38  ;;  %v90_v47 = vadd.f32 %v89_v41, %v88_v34  ;;  %v96_v48 = vadd.f32 %v95_v42, %v94_v35  ;;  %v107_v49 = vrot.slane %v106_v43, 1 }
  0xa6   :  { %v102_v50 = vadd.f32 %v101_v45, %v100_v39  ;;  %v211_v60 = vrot.slane %v198_v55, 7 }
  0xa7   :  { %v108_v52 = vadd.f32 %v107_v49, %v106_v43  ;;  %v158_v53 = vcombine.low %v90_v47, %v96_v48  ;;  %v165_v54 = vrot.slane %v157_v46, %v164_v4 }
  0xa9   :  { %v172_v56 = vrot.slane %v158_v53, %v164_v4  ;;  %v174_v57 = vcombine.low %v102_v50, %v108_v52 }
  0xab   :  { %v173_v58 = vcombine.low %v165_v54, %v172_v56  ;;  %v181_v59 = vrot.slane %v174_v57, %v164_v4 }
  0xad   :  { %v213_v62 = vsel %vm212_vm0, %v211_v60, %v173_v58  ;;  %v223_v63 = vsel %vm212_vm0, %v222_v61, %v181_v59 }
  0xae   :  { %v215_v2 = vsel %vm214_vm1, %v211_v60, %v213_v62  ;;  %v224_v3 = vsel %vm214_vm1, %v222_v61, %v223_v63 }
  0xaf   :  { %v217_v5 = vsel %vm216_vm2, %v211_v60, %v215_v2  ;;  %v225_v6 = vsel %vm216_vm2, %v222_v61, %v224_v3 }
  0xb0   :  { %v219_v7 = vsel %vm218_vm3, %v211_v60, %v217_v5  ;;  %v226_v8 = vsel %vm218_vm3, %v222_v61, %v225_v6 }
  0xb1   :  { %v230_v9 = vadd.f32 %v226_v8, %v46_v0  ;;  %231 = vst [vmem:[#allocation5] sm:$0xff] %v219_v7 }
  0xb3   :  { %232 = vst [vmem:[#allocation5 + $0x8] sm:$0xf] %v230_v9 }
  0xb4   :  { %287 = shalt.err (!%p284_p12)
}
  0xb5   :  { %s288_s28 = scalar_lea.hbm %s357_s2, 192 }
  0xb6   :  { %p289_p13 = scmp.ne.s32.totalorder %s357_s2, %s288_s28  ;;  %p292_p0 = scmp.lt.u32.totalorder %s288_s28, %s357_s2 }
  0xb8   :  { %p294_p1 = pnand %p292_p0, %p289_p13 }
  0xba   :  { %297 = shalt.err (!%p294_p1)
}
  0xbb   :  { %242 = dma.vmem_to_hbm [thread:$0]  %s240_s1, 192, %s357_s2, [#allocation4]  }
  0xbc   :  { %300 = dma.done.wait [#allocation4], 192  }
  0xbd   :  { %301 = vsyncadd [#allocation4], 4294967104 }
  0xbe   :  { %246 = vsyncpa [#allocation3], 1 }
  0xbf   :  { %247 = vsyncpa [#allocation4], 1 }

</bundles_post_ra>
